<compile_context>
chip_gen: v7x
topology: tpu7x:2x2x1
jax: 0.10.0
libtpu: 0.0.40
codegen_flags: <defaults>
</compile_context>

<pallas_src>
import math

import jax
import jax.numpy as jnp
import numpy as np
from jax.experimental import pallas as pl
from jax.experimental.pallas import tpu as pltpu


# ----------------------------------------------------------------------------
# Host-side filter-matrix construction (plain numpy glue)
# ----------------------------------------------------------------------------
def _gaussian_taps(sigma, truncate=4, kernel_size=None):
    """1D Gaussian taps, matching gaussian_filter_1d's kernel construction."""
    if kernel_size is None:
        kernel_size = int(2 * math.ceil(truncate * float(sigma)) + 1)
    kernel_size = int(kernel_size)
    mean = (kernel_size - 1) / 2.0
    grid = np.arange(kernel_size, dtype=np.float64) - mean
    k = np.exp(-0.5 * (grid / float(sigma)) ** 2)
    return k / k.sum(), kernel_size


def _conv_matrix(n, sigma, truncate=4, kernel_size=None):
    """Dense (n, n) matrix implementing the 1D Gaussian conv with replicate
    ('nearest') edge padding folded into the boundary columns."""
    taps, ks = _gaussian_taps(sigma, truncate, kernel_size)
    radius = math.ceil((ks - 1) / 2)
    mat = np.zeros((n, n), dtype=np.float64)
    for i in range(n):
        for t in range(ks):
            j = min(max(i + t - radius, 0), n - 1)  # replicate / nearest padding
            mat[i, j] += taps[t]
    return mat


# ----------------------------------------------------------------------------
# Chip-aware sizing helpers
# ----------------------------------------------------------------------------
def _vmem_capacity_bytes():
    try:
        info = pltpu.get_tpu_info()
        cap = int(getattr(info, "vmem_capacity_bytes", 0))
        if cap > 0:
            return cap
    except Exception:
        pass
    return 64 << 20  # conservative fallback (v7x per-TensorCore)


def _largest_divisor_at_most(n, cap):
    cap = max(1, min(int(cap), n))
    for d in range(cap, 0, -1):
        if n % d == 0:
            return d
    return 1


def _pick_tb(num_planes, h, w, cap_tb, two_core):
    """Planes per grid step: biggest block that fits the VMEM budget (cap_tb),
    hard-capped at 64 (unrolled transpose loops), split only on 2-TC chips."""
    if num_planes <= 1:
        return 1
    tb = _largest_divisor_at_most(num_planes, min(cap_tb, 64))
    if two_core and num_planes // tb < 2:
        alt = _largest_divisor_at_most(num_planes, max(1, tb // 2))
        if alt * max(h, w) >= 128:  # don't starve the MXU just to feed 2 cores
            tb = alt
    return tb


# ----------------------------------------------------------------------------
# Pallas kernel: TB (H, W) planes per grid step, both blurs as one matmul each
# ----------------------------------------------------------------------------
def _make_kernel(tb, h, w, compute_dtype):
    def kernel(ght_ref, gwt_ref, x_ref, o_ref, t_ref):
        # x_ref: (tb, h, w) block of planes.  ght_ref = G_h^T, gwt_ref = G_w^T
        # (transposed once on the host, resident across the whole grid).
        xb = x_ref[...].astype(compute_dtype)

        # ---- W-blur (dim 3): one (tb*h, w) @ (w, w) MXU matmul for all planes ----
        y = jnp.dot(xb.reshape(tb * h, w), gwt_ref[...],
                    preferred_element_type=jnp.float32)
        y = y.reshape(tb, h, w).astype(compute_dtype)

        # Stage per-plane 2-D transposes into VMEM scratch (XLU slot, overlaps MXU).
        for b in range(tb):
            t_ref[b] = y[b].T                                   # (w, h)

        # ---- H-blur (dim 2): one (tb*w, h) @ (h, h) MXU matmul for all planes ----
        z = jnp.dot(t_ref[...].reshape(tb * w, h), ght_ref[...],
                    preferred_element_type=jnp.float32)
        z = z.reshape(tb, w, h)
        for b in range(tb):
            o_ref[b] = z[b].T.astype(o_ref.dtype)

    return kernel


# ----------------------------------------------------------------------------
# Public wrapper: GaussianFilterNd.forward for NCHW, dims=[2, 3]
# ----------------------------------------------------------------------------
def gaussian_filter_nd(x, sigma, *, dims=(2, 3), truncate=4, kernel_size=None,
                       padding_mode='nearest', padding_value=0.0,
                       high_precision=False):
    assert set(dims) == {2, 3}, "this Pallas port implements dims=[2, 3] (H, W of NCHW)"
    assert padding_mode == 'nearest'
    B, C, H, W = x.shape
    P = B * C

    # Float inputs keep their dtype end-to-end; non-float inputs are computed
    # and RETURNED in float32 (no silent truncation back to int).
    if x.dtype in (jnp.bfloat16, jnp.float16, jnp.float32):
        io_dtype = x.dtype
    else:
        io_dtype = jnp.float32
    xr = x.reshape(P, H, W).astype(io_dtype)

    # MXU operand dtype: bf16 (native MXU) by default, f32 on request.
    if high_precision and io_dtype == jnp.float32:
        compute_dtype = jnp.float32
    else:
        compute_dtype = jnp.bfloat16
    c_isz = np.dtype(compute_dtype).itemsize
    io_isz = np.dtype(io_dtype).itemsize

    # Host-built filter matrices, pre-transposed for right-multiplication.
    ght = jnp.asarray(_conv_matrix(H, sigma, truncate, kernel_size).T, dtype=compute_dtype)
    gwt = jnp.asarray(_conv_matrix(W, sigma, truncate, kernel_size).T, dtype=compute_dtype)

    # --- per-chip VMEM-aware sizing ---
    vmem_cap = _vmem_capacity_bytes()
    is_small_vmem = vmem_cap <= (64 << 20)               # v7x-like: 64 MiB/TC, 2 TCs
    chip_limit_cap = max(vmem_cap - (16 << 20), 32 << 20)  # headroom for compiler scratch
    block_budget = (24 << 20) if is_small_vmem else (56 << 20)

    # G counted at 2x (default pipeline double-buffering of grid-invariant inputs);
    # per plane: 2x in block + 2x out block + transpose scratch + ~3 f32 temporaries.
    g_bytes = 2 * (H * H + W * W) * c_isz
    per_plane = H * W * (2 * io_isz + 2 * io_isz + c_isz + 3 * 4)
    cap_tb = max(1, (block_budget - g_bytes) // per_plane)

    tb = _pick_tb(P, H, W, cap_tb, two_core=is_small_vmem)
    grid_len = P // tb

    need = g_bytes + tb * per_plane
    vmem_limit = int(min(chip_limit_cap, max(need + (8 << 20), 32 << 20)))

    cost = pl.CostEstimate(
        flops=2 * P * H * W * (H + W),
        transcendentals=0,
        bytes_accessed=2 * P * H * W * io_isz + (H * H + W * W) * c_isz)

    out = pl.pallas_call(
        _make_kernel(tb, H, W, compute_dtype),
        out_shape=jax.ShapeDtypeStruct((P, H, W), io_dtype),
        grid_spec=pltpu.PrefetchScalarGridSpec(
            num_scalar_prefetch=0,
            grid=(grid_len,),
            in_specs=[
                pl.BlockSpec((H, H), lambda b: (0, 0)),         # G_h^T, grid-invariant
                pl.BlockSpec((W, W), lambda b: (0, 0)),         # G_w^T, grid-invariant
                pl.BlockSpec((tb, H, W), lambda b: (b, 0, 0)),  # plane block
            ],
            out_specs=pl.BlockSpec((tb, H, W), lambda b: (b, 0, 0)),
            scratch_shapes=[pltpu.VMEM((tb, W, H), compute_dtype)],
        ),
        compiler_params=pltpu.CompilerParams(
            dimension_semantics=("parallel",),
            vmem_limit_bytes=vmem_limit),
        cost_estimate=cost,
    )(ght, gwt, xr)

    return out.reshape(B, C, H, W)


# ----------------------------------------------------------------------------
# Pure-JAX reference (same math, no Pallas) for a correctness check
# ----------------------------------------------------------------------------
def _reference(x, sigma, truncate=4, kernel_size=None):
    B, C, H, W = x.shape
    gh = jnp.asarray(_conv_matrix(H, sigma, truncate, kernel_size), dtype=jnp.float32)
    gw = jnp.asarray(_conv_matrix(W, sigma, truncate, kernel_size), dtype=jnp.float32)
    xf = x.astype(jnp.float32)
    y = jnp.einsum('ij,bcjw->bciw', gh, xf)   # dim 2 (H)
    y = jnp.einsum('ij,bchj->bchi', gw, y)    # dim 3 (W)
    return y


if __name__ == "__main__":
    key = jax.random.PRNGKey(0)
    B, C, H, W = 2, 4, 16, 16
    x = jax.random.normal(key, (B, C, H, W), dtype=jnp.float32)

    # Deterministic "parameter": sigma (nn.Parameter in the torch module).
    sigma = 1.5
    truncate = 4

    ref = _reference(x, sigma, truncate=truncate)

    # Default path: bf16 operands on the MXU, f32 accumulation.
    out = gaussian_filter_nd(x, sigma, dims=(2, 3), truncate=truncate)
    out = jax.block_until_ready(out)
    assert out.shape == x.shape and out.dtype == x.dtype
    np.testing.assert_allclose(np.asarray(out), np.asarray(ref), rtol=2e-2, atol=2e-2)

    # High-precision path: float32 operands end-to-end.
    out_hp = gaussian_filter_nd(x, sigma, dims=(2, 3), truncate=truncate,
                                high_precision=True)
    out_hp = jax.block_until_ready(out_hp)
    np.testing.assert_allclose(np.asarray(out_hp), np.asarray(ref), rtol=1e-5, atol=1e-5)

    print("KERNEL_OK")
</pallas_src>

<mosaic_0001>
module attributes {stable_mosaic.version = 11 : i64} {
  func.func @kernel(%arg0: i32, %arg1: memref<16x16xbf16, #tpu.memory_space<vmem>>, %arg2: memref<16x16xbf16, #tpu.memory_space<vmem>>, %arg3: memref<8x16x16xf32, #tpu.memory_space<vmem>>, %arg4: memref<8x16x16xf32, #tpu.memory_space<vmem>>, %arg5: memref<8x16x16xbf16, #tpu.memory_space<vmem>>) attributes {dimension_semantics = [#tpu.dimension_semantics<parallel>], iteration_bounds = array<i64: 1>, scalar_prefetch = 0 : i64, scratch_operands = 1 : i64, tpu.core_type = #tpu.core_type<tc>, window_params = [{pipeline_mode = #tpu.pipeline_mode<synchronous>, transform_indices = @transform_0, window_bounds = array<i64: 16, 16>}, {pipeline_mode = #tpu.pipeline_mode<synchronous>, transform_indices = @transform_1, window_bounds = array<i64: 16, 16>}, {transform_indices = @transform_2, window_bounds = array<i64: 8, 16, 16>}, {transform_indices = @transform_3, window_bounds = array<i64: 8, 16, 16>}]} {
    %c0 = arith.constant 0 : index
    %c0_0 = arith.constant 0 : index
    %c0_1 = arith.constant 0 : index
    %0 = vector.load %arg3[%c0, %c0_0, %c0_1] : memref<8x16x16xf32, #tpu.memory_space<vmem>>, vector<8x16x16xf32>
    %1 = arith.truncf %0 : vector<8x16x16xf32> to vector<8x16x16xbf16>
    %2 = vector.shape_cast %1 : vector<8x16x16xbf16> to vector<128x16xbf16>
    %c0_2 = arith.constant 0 : index
    %c0_3 = arith.constant 0 : index
    %3 = vector.load %arg2[%c0_2, %c0_3] : memref<16x16xbf16, #tpu.memory_space<vmem>>, vector<16x16xbf16>
    %cst = arith.constant dense<0.000000e+00> : vector<128x16xf32>
    %4 = tpu.matmul %2, %3, %cst {dimension_numbers = #tpu.dot_dimension_numbers<[1], [0], [0], [1], [0, 0, 1, 1], [], []>} : vector<128x16xbf16>, vector<16x16xbf16>, vector<128x16xf32> -> vector<128x16xf32>
    %5 = vector.shape_cast %4 : vector<128x16xf32> to vector<8x16x16xf32>
    %6 = arith.truncf %5 : vector<8x16x16xf32> to vector<8x16x16xbf16>
    %7 = vector.extract_strided_slice %6 {offsets = [0, 0, 0], sizes = [1, 16, 16], strides = [1, 1, 1]} : vector<8x16x16xbf16> to vector<1x16x16xbf16>
    %8 = vector.shape_cast %7 : vector<1x16x16xbf16> to vector<16x16xbf16>
    %9 = tpu.transpose %8, [1, 0] : vector<16x16xbf16> -> vector<16x16xbf16>
    %c0_4 = arith.constant 0 : index
    %c0_5 = arith.constant 0 : index
    %c0_6 = arith.constant 0 : index
    %10 = vector.load %arg5[%c0_4, %c0_5, %c0_6] : memref<8x16x16xbf16, #tpu.memory_space<vmem>>, vector<1x16x16xbf16>
    %11 = vector.shape_cast %10 : vector<1x16x16xbf16> to vector<16x16xbf16>
    %12 = vector.shape_cast %9 : vector<16x16xbf16> to vector<1x16x16xbf16>
    tpu.vector_store %arg5[%c0_4, %c0_5, %c0_6], %12 {strides = array<i32>} : memref<8x16x16xbf16, #tpu.memory_space<vmem>>, vector<1x16x16xbf16>,
    %13 = vector.extract_strided_slice %6 {offsets = [1, 0, 0], sizes = [1, 16, 16], strides = [1, 1, 1]} : vector<8x16x16xbf16> to vector<1x16x16xbf16>
    %14 = vector.shape_cast %13 : vector<1x16x16xbf16> to vector<16x16xbf16>
    %15 = tpu.transpose %14, [1, 0] : vector<16x16xbf16> -> vector<16x16xbf16>
    %c1 = arith.constant 1 : index
    %c0_7 = arith.constant 0 : index
    %c0_8 = arith.constant 0 : index
    %16 = vector.load %arg5[%c1, %c0_7, %c0_8] : memref<8x16x16xbf16, #tpu.memory_space<vmem>>, vector<1x16x16xbf16>
    %17 = vector.shape_cast %16 : vector<1x16x16xbf16> to vector<16x16xbf16>
    %18 = vector.shape_cast %15 : vector<16x16xbf16> to vector<1x16x16xbf16>
    tpu.vector_store %arg5[%c1, %c0_7, %c0_8], %18 {strides = array<i32>} : memref<8x16x16xbf16, #tpu.memory_space<vmem>>, vector<1x16x16xbf16>,
    %19 = vector.extract_strided_slice %6 {offsets = [2, 0, 0], sizes = [1, 16, 16], strides = [1, 1, 1]} : vector<8x16x16xbf16> to vector<1x16x16xbf16>
    %20 = vector.shape_cast %19 : vector<1x16x16xbf16> to vector<16x16xbf16>
    %21 = tpu.transpose %20, [1, 0] : vector<16x16xbf16> -> vector<16x16xbf16>
    %c2 = arith.constant 2 : index
    %c0_9 = arith.constant 0 : index
    %c0_10 = arith.constant 0 : index
    %22 = vector.load %arg5[%c2, %c0_9, %c0_10] : memref<8x16x16xbf16, #tpu.memory_space<vmem>>, vector<1x16x16xbf16>
    %23 = vector.shape_cast %22 : vector<1x16x16xbf16> to vector<16x16xbf16>
    %24 = vector.shape_cast %21 : vector<16x16xbf16> to vector<1x16x16xbf16>
    tpu.vector_store %arg5[%c2, %c0_9, %c0_10], %24 {strides = array<i32>} : memref<8x16x16xbf16, #tpu.memory_space<vmem>>, vector<1x16x16xbf16>,
    %25 = vector.extract_strided_slice %6 {offsets = [3, 0, 0], sizes = [1, 16, 16], strides = [1, 1, 1]} : vector<8x16x16xbf16> to vector<1x16x16xbf16>
    %26 = vector.shape_cast %25 : vector<1x16x16xbf16> to vector<16x16xbf16>
    %27 = tpu.transpose %26, [1, 0] : vector<16x16xbf16> -> vector<16x16xbf16>
    %c3 = arith.constant 3 : index
    %c0_11 = arith.constant 0 : index
    %c0_12 = arith.constant 0 : index
    %28 = vector.load %arg5[%c3, %c0_11, %c0_12] : memref<8x16x16xbf16, #tpu.memory_space<vmem>>, vector<1x16x16xbf16>
    %29 = vector.shape_cast %28 : vector<1x16x16xbf16> to vector<16x16xbf16>
    %30 = vector.shape_cast %27 : vector<16x16xbf16> to vector<1x16x16xbf16>
    tpu.vector_store %arg5[%c3, %c0_11, %c0_12], %30 {strides = array<i32>} : memref<8x16x16xbf16, #tpu.memory_space<vmem>>, vector<1x16x16xbf16>,
    %31 = vector.extract_strided_slice %6 {offsets = [4, 0, 0], sizes = [1, 16, 16], strides = [1, 1, 1]} : vector<8x16x16xbf16> to vector<1x16x16xbf16>
    %32 = vector.shape_cast %31 : vector<1x16x16xbf16> to vector<16x16xbf16>
    %33 = tpu.transpose %32, [1, 0] : vector<16x16xbf16> -> vector<16x16xbf16>
    %c4 = arith.constant 4 : index
    %c0_13 = arith.constant 0 : index
    %c0_14 = arith.constant 0 : index
    %34 = vector.load %arg5[%c4, %c0_13, %c0_14] : memref<8x16x16xbf16, #tpu.memory_space<vmem>>, vector<1x16x16xbf16>
    %35 = vector.shape_cast %34 : vector<1x16x16xbf16> to vector<16x16xbf16>
    %36 = vector.shape_cast %33 : vector<16x16xbf16> to vector<1x16x16xbf16>
    tpu.vector_store %arg5[%c4, %c0_13, %c0_14], %36 {strides = array<i32>} : memref<8x16x16xbf16, #tpu.memory_space<vmem>>, vector<1x16x16xbf16>,
    %37 = vector.extract_strided_slice %6 {offsets = [5, 0, 0], sizes = [1, 16, 16], strides = [1, 1, 1]} : vector<8x16x16xbf16> to vector<1x16x16xbf16>
    %38 = vector.shape_cast %37 : vector<1x16x16xbf16> to vector<16x16xbf16>
    %39 = tpu.transpose %38, [1, 0] : vector<16x16xbf16> -> vector<16x16xbf16>
    %c5 = arith.constant 5 : index
    %c0_15 = arith.constant 0 : index
    %c0_16 = arith.constant 0 : index
    %40 = vector.load %arg5[%c5, %c0_15, %c0_16] : memref<8x16x16xbf16, #tpu.memory_space<vmem>>, vector<1x16x16xbf16>
    %41 = vector.shape_cast %40 : vector<1x16x16xbf16> to vector<16x16xbf16>
    %42 = vector.shape_cast %39 : vector<16x16xbf16> to vector<1x16x16xbf16>
    tpu.vector_store %arg5[%c5, %c0_15, %c0_16], %42 {strides = array<i32>} : memref<8x16x16xbf16, #tpu.memory_space<vmem>>, vector<1x16x16xbf16>,
    %43 = vector.extract_strided_slice %6 {offsets = [6, 0, 0], sizes = [1, 16, 16], strides = [1, 1, 1]} : vector<8x16x16xbf16> to vector<1x16x16xbf16>
    %44 = vector.shape_cast %43 : vector<1x16x16xbf16> to vector<16x16xbf16>
    %45 = tpu.transpose %44, [1, 0] : vector<16x16xbf16> -> vector<16x16xbf16>
    %c6 = arith.constant 6 : index
    %c0_17 = arith.constant 0 : index
    %c0_18 = arith.constant 0 : index
    %46 = vector.load %arg5[%c6, %c0_17, %c0_18] : memref<8x16x16xbf16, #tpu.memory_space<vmem>>, vector<1x16x16xbf16>
    %47 = vector.shape_cast %46 : vector<1x16x16xbf16> to vector<16x16xbf16>
    %48 = vector.shape_cast %45 : vector<16x16xbf16> to vector<1x16x16xbf16>
    tpu.vector_store %arg5[%c6, %c0_17, %c0_18], %48 {strides = array<i32>} : memref<8x16x16xbf16, #tpu.memory_space<vmem>>, vector<1x16x16xbf16>,
    %49 = vector.extract_strided_slice %6 {offsets = [7, 0, 0], sizes = [1, 16, 16], strides = [1, 1, 1]} : vector<8x16x16xbf16> to vector<1x16x16xbf16>
    %50 = vector.shape_cast %49 : vector<1x16x16xbf16> to vector<16x16xbf16>
    %51 = tpu.transpose %50, [1, 0] : vector<16x16xbf16> -> vector<16x16xbf16>
    %c7 = arith.constant 7 : index
    %c0_19 = arith.constant 0 : index
    %c0_20 = arith.constant 0 : index
    %52 = vector.load %arg5[%c7, %c0_19, %c0_20] : memref<8x16x16xbf16, #tpu.memory_space<vmem>>, vector<1x16x16xbf16>
    %53 = vector.shape_cast %52 : vector<1x16x16xbf16> to vector<16x16xbf16>
    %54 = vector.shape_cast %51 : vector<16x16xbf16> to vector<1x16x16xbf16>
    tpu.vector_store %arg5[%c7, %c0_19, %c0_20], %54 {strides = array<i32>} : memref<8x16x16xbf16, #tpu.memory_space<vmem>>, vector<1x16x16xbf16>,
    %c0_21 = arith.constant 0 : index
    %c0_22 = arith.constant 0 : index
    %c0_23 = arith.constant 0 : index
    %55 = vector.load %arg5[%c0_21, %c0_22, %c0_23] : memref<8x16x16xbf16, #tpu.memory_space<vmem>>, vector<8x16x16xbf16>
    %56 = vector.shape_cast %55 : vector<8x16x16xbf16> to vector<128x16xbf16>
    %c0_24 = arith.constant 0 : index
    %c0_25 = arith.constant 0 : index
    %57 = vector.load %arg1[%c0_24, %c0_25] : memref<16x16xbf16, #tpu.memory_space<vmem>>, vector<16x16xbf16>
    %cst_26 = arith.constant dense<0.000000e+00> : vector<128x16xf32>
    %58 = tpu.matmul %56, %57, %cst_26 {dimension_numbers = #tpu.dot_dimension_numbers<[1], [0], [0], [1], [0, 0, 1, 1], [], []>} : vector<128x16xbf16>, vector<16x16xbf16>, vector<128x16xf32> -> vector<128x16xf32>
    %59 = vector.shape_cast %58 : vector<128x16xf32> to vector<8x16x16xf32>
    %60 = vector.extract_strided_slice %59 {offsets = [0, 0, 0], sizes = [1, 16, 16], strides = [1, 1, 1]} : vector<8x16x16xf32> to vector<1x16x16xf32>
    %61 = vector.shape_cast %60 : vector<1x16x16xf32> to vector<16x16xf32>
    %62 = tpu.transpose %61, [1, 0] : vector<16x16xf32> -> vector<16x16xf32>
    %c0_27 = arith.constant 0 : index
    %c0_28 = arith.constant 0 : index
    %c0_29 = arith.constant 0 : index
    %63 = vector.load %arg4[%c0_27, %c0_28, %c0_29] : memref<8x16x16xf32, #tpu.memory_space<vmem>>, vector<1x16x16xf32>
    %64 = vector.shape_cast %63 : vector<1x16x16xf32> to vector<16x16xf32>
    %65 = vector.shape_cast %62 : vector<16x16xf32> to vector<1x16x16xf32>
    tpu.vector_store %arg4[%c0_27, %c0_28, %c0_29], %65 {strides = array<i32>} : memref<8x16x16xf32, #tpu.memory_space<vmem>>, vector<1x16x16xf32>,
    %66 = vector.extract_strided_slice %59 {offsets = [1, 0, 0], sizes = [1, 16, 16], strides = [1, 1, 1]} : vector<8x16x16xf32> to vector<1x16x16xf32>
    %67 = vector.shape_cast %66 : vector<1x16x16xf32> to vector<16x16xf32>
    %68 = tpu.transpose %67, [1, 0] : vector<16x16xf32> -> vector<16x16xf32>
    %c1_30 = arith.constant 1 : index
    %c0_31 = arith.constant 0 : index
    %c0_32 = arith.constant 0 : index
    %69 = vector.load %arg4[%c1_30, %c0_31, %c0_32] : memref<8x16x16xf32, #tpu.memory_space<vmem>>, vector<1x16x16xf32>
    %70 = vector.shape_cast %69 : vector<1x16x16xf32> to vector<16x16xf32>
    %71 = vector.shape_cast %68 : vector<16x16xf32> to vector<1x16x16xf32>
    tpu.vector_store %arg4[%c1_30, %c0_31, %c0_32], %71 {strides = array<i32>} : memref<8x16x16xf32, #tpu.memory_space<vmem>>, vector<1x16x16xf32>,
    %72 = vector.extract_strided_slice %59 {offsets = [2, 0, 0], sizes = [1, 16, 16], strides = [1, 1, 1]} : vector<8x16x16xf32> to vector<1x16x16xf32>
    %73 = vector.shape_cast %72 : vector<1x16x16xf32> to vector<16x16xf32>
    %74 = tpu.transpose %73, [1, 0] : vector<16x16xf32> -> vector<16x16xf32>
    %c2_33 = arith.constant 2 : index
    %c0_34 = arith.constant 0 : index
    %c0_35 = arith.constant 0 : index
    %75 = vector.load %arg4[%c2_33, %c0_34, %c0_35] : memref<8x16x16xf32, #tpu.memory_space<vmem>>, vector<1x16x16xf32>
    %76 = vector.shape_cast %75 : vector<1x16x16xf32> to vector<16x16xf32>
    %77 = vector.shape_cast %74 : vector<16x16xf32> to vector<1x16x16xf32>
    tpu.vector_store %arg4[%c2_33, %c0_34, %c0_35], %77 {strides = array<i32>} : memref<8x16x16xf32, #tpu.memory_space<vmem>>, vector<1x16x16xf32>,
    %78 = vector.extract_strided_slice %59 {offsets = [3, 0, 0], sizes = [1, 16, 16], strides = [1, 1, 1]} : vector<8x16x16xf32> to vector<1x16x16xf32>
    %79 = vector.shape_cast %78 : vector<1x16x16xf32> to vector<16x16xf32>
    %80 = tpu.transpose %79, [1, 0] : vector<16x16xf32> -> vector<16x16xf32>
    %c3_36 = arith.constant 3 : index
    %c0_37 = arith.constant 0 : index
    %c0_38 = arith.constant 0 : index
    %81 = vector.load %arg4[%c3_36, %c0_37, %c0_38] : memref<8x16x16xf32, #tpu.memory_space<vmem>>, vector<1x16x16xf32>
    %82 = vector.shape_cast %81 : vector<1x16x16xf32> to vector<16x16xf32>
    %83 = vector.shape_cast %80 : vector<16x16xf32> to vector<1x16x16xf32>
    tpu.vector_store %arg4[%c3_36, %c0_37, %c0_38], %83 {strides = array<i32>} : memref<8x16x16xf32, #tpu.memory_space<vmem>>, vector<1x16x16xf32>,
    %84 = vector.extract_strided_slice %59 {offsets = [4, 0, 0], sizes = [1, 16, 16], strides = [1, 1, 1]} : vector<8x16x16xf32> to vector<1x16x16xf32>
    %85 = vector.shape_cast %84 : vector<1x16x16xf32> to vector<16x16xf32>
    %86 = tpu.transpose %85, [1, 0] : vector<16x16xf32> -> vector<16x16xf32>
    %c4_39 = arith.constant 4 : index
    %c0_40 = arith.constant 0 : index
    %c0_41 = arith.constant 0 : index
    %87 = vector.load %arg4[%c4_39, %c0_40, %c0_41] : memref<8x16x16xf32, #tpu.memory_space<vmem>>, vector<1x16x16xf32>
    %88 = vector.shape_cast %87 : vector<1x16x16xf32> to vector<16x16xf32>
    %89 = vector.shape_cast %86 : vector<16x16xf32> to vector<1x16x16xf32>
    tpu.vector_store %arg4[%c4_39, %c0_40, %c0_41], %89 {strides = array<i32>} : memref<8x16x16xf32, #tpu.memory_space<vmem>>, vector<1x16x16xf32>,
    %90 = vector.extract_strided_slice %59 {offsets = [5, 0, 0], sizes = [1, 16, 16], strides = [1, 1, 1]} : vector<8x16x16xf32> to vector<1x16x16xf32>
    %91 = vector.shape_cast %90 : vector<1x16x16xf32> to vector<16x16xf32>
    %92 = tpu.transpose %91, [1, 0] : vector<16x16xf32> -> vector<16x16xf32>
    %c5_42 = arith.constant 5 : index
    %c0_43 = arith.constant 0 : index
    %c0_44 = arith.constant 0 : index
    %93 = vector.load %arg4[%c5_42, %c0_43, %c0_44] : memref<8x16x16xf32, #tpu.memory_space<vmem>>, vector<1x16x16xf32>
    %94 = vector.shape_cast %93 : vector<1x16x16xf32> to vector<16x16xf32>
    %95 = vector.shape_cast %92 : vector<16x16xf32> to vector<1x16x16xf32>
    tpu.vector_store %arg4[%c5_42, %c0_43, %c0_44], %95 {strides = array<i32>} : memref<8x16x16xf32, #tpu.memory_space<vmem>>, vector<1x16x16xf32>,
    %96 = vector.extract_strided_slice %59 {offsets = [6, 0, 0], sizes = [1, 16, 16], strides = [1, 1, 1]} : vector<8x16x16xf32> to vector<1x16x16xf32>
    %97 = vector.shape_cast %96 : vector<1x16x16xf32> to vector<16x16xf32>
    %98 = tpu.transpose %97, [1, 0] : vector<16x16xf32> -> vector<16x16xf32>
    %c6_45 = arith.constant 6 : index
    %c0_46 = arith.constant 0 : index
    %c0_47 = arith.constant 0 : index
    %99 = vector.load %arg4[%c6_45, %c0_46, %c0_47] : memref<8x16x16xf32, #tpu.memory_space<vmem>>, vector<1x16x16xf32>
    %100 = vector.shape_cast %99 : vector<1x16x16xf32> to vector<16x16xf32>
    %101 = vector.shape_cast %98 : vector<16x16xf32> to vector<1x16x16xf32>
    tpu.vector_store %arg4[%c6_45, %c0_46, %c0_47], %101 {strides = array<i32>} : memref<8x16x16xf32, #tpu.memory_space<vmem>>, vector<1x16x16xf32>,
    %102 = vector.extract_strided_slice %59 {offsets = [7, 0, 0], sizes = [1, 16, 16], strides = [1, 1, 1]} : vector<8x16x16xf32> to vector<1x16x16xf32>
    %103 = vector.shape_cast %102 : vector<1x16x16xf32> to vector<16x16xf32>
    %104 = tpu.transpose %103, [1, 0] : vector<16x16xf32> -> vector<16x16xf32>
    %c7_48 = arith.constant 7 : index
    %c0_49 = arith.constant 0 : index
    %c0_50 = arith.constant 0 : index
    %105 = vector.load %arg4[%c7_48, %c0_49, %c0_50] : memref<8x16x16xf32, #tpu.memory_space<vmem>>, vector<1x16x16xf32>
    %106 = vector.shape_cast %105 : vector<1x16x16xf32> to vector<16x16xf32>
    %107 = vector.shape_cast %104 : vector<16x16xf32> to vector<1x16x16xf32>
    tpu.vector_store %arg4[%c7_48, %c0_49, %c0_50], %107 {strides = array<i32>} : memref<8x16x16xf32, #tpu.memory_space<vmem>>, vector<1x16x16xf32>,
    return
  }
  func.func @transform_0(%arg0: i32) -> (i32, i32) {
    %c0_i32 = arith.constant 0 : i32
    %c0_i32_0 = arith.constant 0 : i32
    %c0_i32_1 = arith.constant 0 : i32
    return %c0_i32, %c0_i32_0 : i32, i32
  }
  func.func @transform_1(%arg0: i32) -> (i32, i32) {
    %c0_i32 = arith.constant 0 : i32
    %c0_i32_0 = arith.constant 0 : i32
    %c0_i32_1 = arith.constant 0 : i32
    return %c0_i32, %c0_i32_0 : i32, i32
  }
  func.func @transform_2(%arg0: i32) -> (i32, i32, i32) {
    %c0_i32 = arith.constant 0 : i32
    %c0_i32_0 = arith.constant 0 : i32
    %c0_i32_1 = arith.constant 0 : i32
    return %arg0, %c0_i32, %c0_i32_0 : i32, i32, i32
  }
  func.func @transform_3(%arg0: i32) -> (i32, i32, i32) {
    %c0_i32 = arith.constant 0 : i32
    %c0_i32_0 = arith.constant 0 : i32
    %c0_i32_1 = arith.constant 0 : i32
    return %arg0, %c0_i32, %c0_i32_0 : i32, i32, i32
  }
}

</mosaic_0001>

<bundles_post_ra>
// kernel: tpu_custom_call.1
= control target key start
LH: loop header
LB: loop body
LE: loop exit
PB: predicated region body
PF: predicated region fallthrough
CT: control target
= control target key end

     0   :  { %8 = vsyncpa [#allocation4], 0  ;;  %s1103_s0 = inlined_call_operand.hbm [shape: bf16[16,16], index: 0, kind: input, shape index: {}]   ;;  %s1104_s1 = inlined_call_operand.hbm [shape: bf16[16,16], index: 1, kind: input, shape index: {}]   ;;  %s1105_s2 = inlined_call_operand.hbm [shape: f32[8,16,16], index: 2, kind: input, shape index: {}]   ;;  %s1106_s3 = inlined_call_operand.hbm [shape: f32[8,16,16], index: 3, kind: output, shape index: {}]  }
   0x1   :  { %9 = vsyncpa [#allocation7], 0 }
   0x2   :  { %10 = vsyncpa [#allocation5], 0  ;;  %s974_s12 = smov [#allocation6]   ;;  %s975_s14 = smov [#allocation3]  }
   0x3   :  { %s28_s13 = sshll.u32 %s974_s12, 4  ;;  %s16_s15 = sshll.u32 %s975_s14, 4  ;;  %s29_s13 = int_to_ptr.vmem [resolvable:$true] %s28_s13  ;;  %s1002_s15 = int_to_ptr.vmem [resolvable:$true] %s16_s15 }
   0x4   :  { %s880_s18 = scalar_lea.hbm %s1104_s1, 128 }
   0x5   :  { %p881_p0 = scmp.ne.s32.totalorder %s1104_s1, %s880_s18  ;;  %p884_p1 = scmp.lt.u32.totalorder %s880_s18, %s1104_s1 }
   0x7   :  { %p886_p2 = pnand %p884_p1, %p881_p0 }
   0x9   :  { %889 = shalt.err (!%p886_p2)
}
   0xa   :  { %s890_s23 = scalar_lea.vmem %s29_s13, 128  ;;  %p895_p4 = scmp.lt.s32.totalorder %s29_s13, %s29_s13 }
   0xb   :  { %p891_p3 = scmp.ne.s32.totalorder %s29_s13, %s890_s23  ;;  %p896_p5 = scmp.lt.s32.totalorder %s890_s23, %s890_s23 }
   0xd   :  { %p897_p6 = por %p896_p5, %p895_p4 }
   0xf   :  { %p898_p7 = pnand %p897_p6, %p891_p3 }
  0x11   :  { %901 = shalt.err (!%p898_p7)
}
  0x12   :  { %s976_s24 = smov 64   ;;  %s977_s25 = smov 4  }
  0x13   :  { %34 = dma.hbm_to_vmem [thread:$0]  %s1104_s1, 128, %s29_s13, [#allocation7], %s976_s24, %s976_s24, %s977_s25  }
  0x14   :  { %s902_s30 = scalar_lea.hbm %s1103_s0, 128 }
  0x15   :  { %p903_p8 = scmp.ne.s32.totalorder %s1103_s0, %s902_s30  ;;  %p906_p9 = scmp.lt.u32.totalorder %s902_s30, %s1103_s0 }
  0x17   :  { %p908_p10 = pnand %p906_p9, %p903_p8 }
  0x19   :  { %911 = shalt.err (!%p908_p10)
}
  0x1a   :  { %s912_s8 = scalar_lea.vmem %s1002_s15, 128  ;;  %p917_p12 = scmp.lt.s32.totalorder %s1002_s15, %s1002_s15 }
  0x1b   :  { %p913_p11 = scmp.ne.s32.totalorder %s1002_s15, %s912_s8  ;;  %p918_p13 = scmp.lt.s32.totalorder %s912_s8, %s912_s8 }
  0x1d   :  { %p919_p0 = por %p918_p13, %p917_p12 }
  0x1f   :  { %p920_p1 = pnand %p919_p0, %p913_p11 }
  0x21   :  { %923 = shalt.err (!%p920_p1)
}
  0x22   :  { %22 = dma.hbm_to_vmem [thread:$0]  %s1103_s0, 128, %s1002_s15, [#allocation4], %s976_s24, %s976_s24, %s977_s25  }
  0x23   :  { %s978_s10 = smov [#allocation8]   ;;  %s924_s14 = scalar_lea.hbm %s1105_s2, 2048 }
  0x24   :  { %s40_s11 = sshll.u32 %s978_s10, 4  ;;  %p925_p2 = scmp.ne.s32.totalorder %s1105_s2, %s924_s14  ;;  %s41_s11 = int_to_ptr.vmem [resolvable:$true] %s40_s11 }
  0x25   :  { %p928_p3 = scmp.lt.u32.totalorder %s924_s14, %s1105_s2 }
  0x27   :  { %p930_p4 = pnand %p928_p3, %p925_p2 }
  0x29   :  { %933 = shalt.err (!%p930_p4)
}
  0x2a   :  { %s934_s20 = scalar_lea.vmem %s41_s11, 2048  ;;  %p939_p6 = scmp.lt.s32.totalorder %s41_s11, %s41_s11 }
  0x2b   :  { %p935_p5 = scmp.ne.s32.totalorder %s41_s11, %s934_s20  ;;  %p940_p7 = scmp.lt.s32.totalorder %s934_s20, %s934_s20 }
  0x2d   :  { %p941_p8 = por %p940_p7, %p939_p6 }
  0x2f   :  { %p942_p9 = pnand %p941_p8, %p935_p5 }
  0x31   :  { %945 = shalt.err (!%p942_p9)
}
  0x32   :  { %s979_s0 = smov 128   ;;  %s980_s15 = smov 8  }
  0x33   :  { %46 = dma.hbm_to_vmem [thread:$0]  %s1105_s2, 2048, %s41_s11, [#allocation7], %s979_s0, %s979_s0, %s980_s15  }
  0x34   :  { %968 = dma.done.wait [#allocation4], 128  }
  0x35   :  { %969 = vsyncadd [#allocation4], 4294967168 }
  0x36   :  { %970 = dma.done.wait [#allocation7], 2176  }
  0x37   :  { %971 = vsyncadd [#allocation7], 4294965120  ;;  %v878_v0 = vld [vmem:[#allocation6] sm:$0xff]   ;;  %v57_v1 = vld [vmem:[#allocation8] sm:$0xff]  ;;  %vm89_vm0 = vcmask 130048   ;;  %s981_s2 = smov [#allocation9]  }
  0x38   :  { %v58_v2 = vld [vmem:[#allocation8 + $0x8] sm:$0xff]  ;;  %v59_v3 = vld [vmem:[#allocation8 + $0x10] sm:$0xff]  ;;  %832 = vmatprep.subr.bf16.mxu0 %v878_v0  ;;  %v60_v5 = vld [vmem:[#allocation8 + $0x18] sm:$0xff]  ;;  %s783_s23 = sshll.u32 %s981_s2, 4  ;;  %s784_s23 = int_to_ptr.vmem [resolvable:$true] %s783_s23 }
  0x39   :  { %v73_v4 = vpack.c.bf16 %v58_v2, %v57_v1  ;;  %v61_v6 = vld [vmem:[#allocation8 + $0x20] sm:$0xff]  ;;  %v62_v7 = vld [vmem:[#allocation8 + $0x28] sm:$0xff]  ;;  %833 = vmatpush3.bf16.msra.mxu0 %v878_v0  ;;  %v74_v8 = vpack.c.bf16 %v60_v5, %v59_v3  ;;  %v63_v10 = vld [vmem:[#allocation8 + $0x30] sm:$0xff]  ;;  %s946_s24 = scalar_lea.vmem %s784_s23, 2048  ;;  %p951_p11 = scmp.lt.s32.totalorder %s784_s23, %s784_s23 }
  0x3a   :  { %v75_v9 = vpack.c.bf16 %v62_v7, %v61_v6  ;;  %v64_v11 = vld [vmem:[#allocation8 + $0x38] sm:$0xff]  ;;  %v65_v12 = vld [vmem:[#allocation8 + $0x40] sm:$0xff]  ;;  %v66_v13 = vld [vmem:[#allocation8 + $0x48] sm:$0xff]  ;;  %p947_p10 = scmp.ne.s32.totalorder %s784_s23, %s946_s24  ;;  %p952_p12 = scmp.lt.s32.totalorder %s946_s24, %s946_s24 }
  0x3b   :  { %834 = vmatprep.mubr.msk.bf16.mxu0 %vm89_vm0, %v73_v4  ;;  %v76_v14 = vpack.c.bf16 %v64_v11, %v63_v10  ;;  %v77_v15 = vpack.c.bf16 %v66_v13, %v65_v12  ;;  %v67_v16 = vld [vmem:[#allocation8 + $0x50] sm:$0xff]  ;;  %v68_v17 = vld [vmem:[#allocation8 + $0x58] sm:$0xff]  ;;  %v69_v18 = vld [vmem:[#allocation8 + $0x60] sm:$0xff] }
  0x3c   :  { %835 = vmatmul.mubr.msk.bf16.vlgmr.msra.gmra.mrb[0].mxu0 %vm89_vm0, %v74_v8  ;;  %v70_v19 = vld [vmem:[#allocation8 + $0x68] sm:$0xff]  ;;  %v78_v20 = vpack.c.bf16 %v68_v17, %v67_v16  ;;  %v71_v22 = vld [vmem:[#allocation8 + $0x70] sm:$0xff]  ;;  %v72_v23 = vld [vmem:[#allocation8 + $0x78] sm:$0xff]  ;;  %p953_p13 = por %p952_p12, %p951_p11 }
  0x3d   :  { %838 = vmatprep.mubr.msk.bf16.mxu0 %vm89_vm0, %v75_v9  ;;  %v79_v21 = vpack.c.bf16 %v70_v19, %v69_v18  ;;  %v80_v24 = vpack.c.bf16 %v72_v23, %v71_v22  ;;  %v879_v25 = vld [vmem:[#allocation3] sm:$0xff]  }
  0x3e   :  { %850 = vmatprep.subr.bf16.mxu1 %v879_v25  ;;  %p954_p0 = pnand %p953_p13, %p947_p10 }
  0x3f   :  { %851 = vmatpush3.bf16.msra.mxu1 %v879_v25 }
  0x44   :  { %839 = vmatmul.mubr.msk.bf16.gmra.mrb[4].mxu0 %vm89_vm0, %v76_v14 }
  0x45   :  { %842 = vmatprep.mubr.msk.bf16.mxu0 %vm89_vm0, %v77_v15 }
  0x4c   :  { %843 = vmatmul.mubr.msk.bf16.gmra.mrb[8].mxu0 %vm89_vm0, %v78_v20 }
  0x4d   :  { %846 = vmatprep.mubr.msk.bf16.mxu0 %vm89_vm0, %v79_v21 }
  0x54   :  { %847 = vmatmul.mubr.msk.bf16.gmra.mrb[12].mxu0 %vm89_vm0, %v80_v24 }
 0x10f   :  { %v836_v26 = vpop.f32.mrb[0].mxu0 }
 0x110   :  { %v148_v27 = vpop.f32.mrb[1].mxu0 }
 0x111   :  { %v837_v28 = vpop.f32.mrb[2].mxu0 }
 0x112   :  { %v212_v29 = vpack.c.bf16 %v837_v28, %v836_v26  ;;  %v151_v30 = vpop.f32.mrb[3].mxu0 }
 0x113   :  { %v211_v31 = vpack.c.bf16 %v151_v30, %v148_v27 }
 0x115   :  { %219 = vxpose.xlu0.c.b16.start.end [1/1] (short) (narrow) %v211_v31, 16 }
 0x117   :  { %v840_v32 = vpop.f32.mrb[4].mxu0 }
 0x118   :  { %v164_v33 = vpop.f32.mrb[5].mxu0 }
 0x119   :  { %236 = vxpose.xlu0.c.b16.start.end [1/1] (short) (narrow) %v212_v29, 16  ;;  %v841_v34 = vpop.f32.mrb[6].mxu0 }
 0x11a   :  { %v214_v35 = vpack.c.bf16 %v841_v34, %v840_v32  ;;  %v167_v36 = vpop.f32.mrb[7].mxu0 }
 0x11b   :  { %v213_v37 = vpack.c.bf16 %v167_v36, %v164_v33 }
 0x11d   :  { %254 = vxpose.xlu1.c.b16.start.end [1/1] (short) (narrow) %v213_v37, 16 }
 0x11f   :  { %v844_v38 = vpop.f32.mrb[8].mxu0 }
 0x120   :  { %v180_v39 = vpop.f32.mrb[9].mxu0 }
 0x121   :  { %272 = vxpose.xlu1.c.b16.start.end [1/1] (short) (narrow) %v214_v35, 16  ;;  %v845_v40 = vpop.f32.mrb[10].mxu0 }
 0x122   :  { %v216_v41 = vpack.c.bf16 %v845_v40, %v844_v38  ;;  %v183_v42 = vpop.f32.mrb[11].mxu0 }
 0x123   :  { %v215_v43 = vpack.c.bf16 %v183_v42, %v180_v39 }
 0x125   :  { %308 = vxpose.xlu1.c.b16.start.end [1/1] (short) (narrow) %v216_v41, 16  ;;  %290 = vxpose.xlu0.c.b16.start.end [1/1] (short) (narrow) %v215_v43, 16 }
 0x127   :  { %v848_v44 = vpop.f32.mrb[12].mxu0 }
 0x128   :  { %v196_v45 = vpop.f32.mrb[13].mxu0 }
 0x129   :  { %v849_v46 = vpop.f32.mrb[14].mxu0 }
 0x12a   :  { %v218_v47 = vpack.c.bf16 %v849_v46, %v848_v44  ;;  %v199_v48 = vpop.f32.mrb[15].mxu0 }
 0x12b   :  { %v217_v49 = vpack.c.bf16 %v199_v48, %v196_v45 }
 0x12c   :  { %344 = vxpose.xlu1.c.b16.start.end [1/1] (short) (narrow) %v218_v47, 16 }
 0x12d   :  { %326 = vxpose.xlu0.c.b16.start.end [1/1] (short) (narrow) %v217_v49, 16 }
 0x17b   :  { %v227_v50 = vpop.trf.xlu0 }
 0x17c   :  { %235 = vst.msk [vmem:[#allocation2] sm:$0xff] %vm89_vm0, %v227_v50 }
 0x17f   :  { %v244_v51 = vpop.trf.xlu0 }
 0x180   :  { %253 = vst.msk [vmem:[#allocation2 + $0x8] sm:$0xff] %vm89_vm0, %v244_v51 }
 0x183   :  { %v262_v52 = vpop.trf.xlu1  ;;  %v362_v53 = vld [vmem:[#allocation2] sm:$0xff] }
 0x184   :  { %271 = vst.msk [vmem:[#allocation2 + $0x10] sm:$0xff] %vm89_vm0, %v262_v52  ;;  %852 = vmatprep.mubr.msk.bf16.mxu1 %vm89_vm0, %v362_v53 }
 0x187   :  { %v280_v54 = vpop.trf.xlu1  ;;  %v363_v55 = vld [vmem:[#allocation2 + $0x8] sm:$0xff] }
 0x188   :  { %289 = vst.msk [vmem:[#allocation2 + $0x18] sm:$0xff] %vm89_vm0, %v280_v54  ;;  %853 = vmatmul.mubr.msk.bf16.vlgmr.msra.gmra.mrb[0].mxu1 %vm89_vm0, %v363_v55 }
 0x18b   :  { %v364_v56 = vld [vmem:[#allocation2 + $0x10] sm:$0xff]  ;;  %v298_v57 = vpop.trf.xlu0  ;;  %v316_v58 = vpop.trf.xlu1 }
 0x18c   :  { %856 = vmatprep.mubr.msk.bf16.mxu1 %vm89_vm0, %v364_v56  ;;  %307 = vst.msk [vmem:[#allocation2 + $0x20] sm:$0xff] %vm89_vm0, %v298_v57  ;;  %325 = vst.msk [vmem:[#allocation2 + $0x28] sm:$0xff] %vm89_vm0, %v316_v58 }
 0x18f   :  { %v365_v59 = vld [vmem:[#allocation2 + $0x18] sm:$0xff] }
 0x190   :  { %857 = vmatmul.mubr.msk.bf16.gmra.mrb[4].mxu1 %vm89_vm0, %v365_v59 }
 0x192   :  { %v352_v60 = vpop.trf.xlu1 }
 0x193   :  { %v334_v61 = vpop.trf.xlu0  ;;  %v366_v62 = vld [vmem:[#allocation2 + $0x20] sm:$0xff]  ;;  %361 = vst.msk [vmem:[#allocation2 + $0x38] sm:$0xff] %vm89_vm0, %v352_v60  ;;  %v367_v63 = vld [vmem:[#allocation2 + $0x28] sm:$0xff] }
 0x194   :  { %343 = vst.msk [vmem:[#allocation2 + $0x30] sm:$0xff] %vm89_vm0, %v334_v61  ;;  %860 = vmatprep.mubr.msk.bf16.mxu1 %vm89_vm0, %v366_v62 }
 0x198   :  { %861 = vmatmul.mubr.msk.bf16.gmra.mrb[8].mxu1 %vm89_vm0, %v367_v63 }
 0x19a   :  { %v369_v1 = vld [vmem:[#allocation2 + $0x38] sm:$0xff] }
 0x19b   :  { %v368_v0 = vld [vmem:[#allocation2 + $0x30] sm:$0xff] }
 0x19c   :  { %864 = vmatprep.mubr.msk.bf16.mxu1 %vm89_vm0, %v368_v0 }
 0x1a0   :  { %865 = vmatmul.mubr.msk.bf16.gmra.mrb[12].mxu1 %vm89_vm0, %v369_v1 }
 0x25b   :  { %v854_v2 = vpop.f32.mrb[0].mxu1 }
 0x25c   :  { %v436_v3 = vpop.f32.mrb[1].mxu1  ;;  %533 = vxpose.xlu1.b32.start [1/2] (short) (narrow) %v854_v2, 16 }
 0x25d   :  { %v855_v4 = vpop.f32.mrb[2].mxu1  ;;  %499 = vxpose.xlu0.b32.start [1/2] (short) (narrow) %v436_v3, 16 }
 0x25e   :  { %v439_v5 = vpop.f32.mrb[3].mxu1 }
 0x260   :  { %534 = vxpose.xlu1.b32.end [2/2] (short) (narrow) %v855_v4, 16 }
 0x261   :  { %500 = vxpose.xlu0.b32.end [2/2] (short) (narrow) %v439_v5, 16 }
 0x263   :  { %v858_v6 = vpop.f32.mrb[4].mxu1 }
 0x264   :  { %v452_v7 = vpop.f32.mrb[5].mxu1  ;;  %603 = vxpose.xlu1.b32.start [1/2] (short) (narrow) %v858_v6, 16 }
 0x265   :  { %v859_v8 = vpop.f32.mrb[6].mxu1  ;;  %568 = vxpose.xlu0.b32.start [1/2] (short) (narrow) %v452_v7, 16 }
 0x266   :  { %v455_v9 = vpop.f32.mrb[7].mxu1 }
 0x268   :  { %604 = vxpose.xlu1.b32.end [2/2] (short) (narrow) %v859_v8, 16 }
 0x269   :  { %569 = vxpose.xlu0.b32.end [2/2] (short) (narrow) %v455_v9, 16 }
 0x26b   :  { %v862_v10 = vpop.f32.mrb[8].mxu1 }
 0x26c   :  { %v468_v11 = vpop.f32.mrb[9].mxu1  ;;  %673 = vxpose.xlu1.b32.start [1/2] (short) (narrow) %v862_v10, 16 }
 0x26d   :  { %v863_v12 = vpop.f32.mrb[10].mxu1  ;;  %638 = vxpose.xlu0.b32.start [1/2] (short) (narrow) %v468_v11, 16 }
 0x26e   :  { %v471_v13 = vpop.f32.mrb[11].mxu1 }
 0x270   :  { %674 = vxpose.xlu1.b32.end [2/2] (short) (narrow) %v863_v12, 16 }
 0x271   :  { %639 = vxpose.xlu0.b32.end [2/2] (short) (narrow) %v471_v13, 16 }
 0x273   :  { %v866_v14 = vpop.f32.mrb[12].mxu1 }
 0x274   :  { %743 = vxpose.xlu1.b32.start [1/2] (short) (narrow) %v866_v14, 16  ;;  %v484_v15 = vpop.f32.mrb[13].mxu1 }
 0x275   :  { %708 = vxpose.xlu0.b32.start [1/2] (short) (narrow) %v484_v15, 16  ;;  %v867_v16 = vpop.f32.mrb[14].mxu1 }
 0x276   :  { %v487_v17 = vpop.f32.mrb[15].mxu1 }
 0x278   :  { %744 = vxpose.xlu1.b32.end [2/2] (short) (narrow) %v867_v16, 16 }
 0x279   :  { %709 = vxpose.xlu0.b32.end [2/2] (short) (narrow) %v487_v17, 16 }
 0x2dc   :  { %v549_v18 = vpop.trf.xlu1 }
 0x2dd   :  { %566 = vst.msk [vmem:[#allocation9 + $0x10] sm:$0xff] %vm89_vm0, %v549_v18  ;;  %v515_v19 = vpop.trf.xlu0 }
 0x2de   :  { %531 = vst.msk [vmem:[#allocation9] sm:$0xff] %vm89_vm0, %v515_v19 }
 0x2e0   :  { %v550_v20 = vpop.trf.xlu1 }
 0x2e1   :  { %567 = vst.msk [vmem:[#allocation9 + $0x18] sm:$0xff] %vm89_vm0, %v550_v20  ;;  %v516_v21 = vpop.trf.xlu0 }
 0x2e2   :  { %532 = vst.msk [vmem:[#allocation9 + $0x8] sm:$0xff] %vm89_vm0, %v516_v21 }
 0x2e4   :  { %v619_v22 = vpop.trf.xlu1 }
 0x2e5   :  { %636 = vst.msk [vmem:[#allocation9 + $0x30] sm:$0xff] %vm89_vm0, %v619_v22  ;;  %v584_v23 = vpop.trf.xlu0 }
 0x2e6   :  { %601 = vst.msk [vmem:[#allocation9 + $0x20] sm:$0xff] %vm89_vm0, %v584_v23 }
 0x2e8   :  { %v620_v24 = vpop.trf.xlu1 }
 0x2e9   :  { %637 = vst.msk [vmem:[#allocation9 + $0x38] sm:$0xff] %vm89_vm0, %v620_v24  ;;  %v585_v25 = vpop.trf.xlu0 }
 0x2ea   :  { %602 = vst.msk [vmem:[#allocation9 + $0x28] sm:$0xff] %vm89_vm0, %v585_v25 }
 0x2ec   :  { %v689_v26 = vpop.trf.xlu1 }
 0x2ed   :  { %706 = vst.msk [vmem:[#allocation9 + $0x50] sm:$0xff] %vm89_vm0, %v689_v26  ;;  %v654_v27 = vpop.trf.xlu0 }
 0x2ee   :  { %671 = vst.msk [vmem:[#allocation9 + $0x40] sm:$0xff] %vm89_vm0, %v654_v27 }
 0x2f0   :  { %v690_v28 = vpop.trf.xlu1 }
 0x2f1   :  { %707 = vst.msk [vmem:[#allocation9 + $0x58] sm:$0xff] %vm89_vm0, %v690_v28  ;;  %v655_v29 = vpop.trf.xlu0 }
 0x2f2   :  { %672 = vst.msk [vmem:[#allocation9 + $0x48] sm:$0xff] %vm89_vm0, %v655_v29 }
 0x2f4   :  { %v759_v30 = vpop.trf.xlu1 }
 0x2f5   :  { %776 = vst.msk [vmem:[#allocation9 + $0x70] sm:$0xff] %vm89_vm0, %v759_v30  ;;  %v724_v31 = vpop.trf.xlu0 }
 0x2f6   :  { %741 = vst.msk [vmem:[#allocation9 + $0x60] sm:$0xff] %vm89_vm0, %v724_v31 }
 0x2f8   :  { %v760_v32 = vpop.trf.xlu1 }
 0x2f9   :  { %777 = vst.msk [vmem:[#allocation9 + $0x78] sm:$0xff] %vm89_vm0, %v760_v32  ;;  %v725_v33 = vpop.trf.xlu0 }
 0x2fa   :  { %742 = vst.msk [vmem:[#allocation9 + $0x68] sm:$0xff] %vm89_vm0, %v725_v33 }
 0x2fb   :  { %957 = shalt.err (!%p954_p0)
}
 0x2fc   :  { %s958_s27 = scalar_lea.hbm %s1106_s3, 2048 }
 0x2fd   :  { %p959_p1 = scmp.ne.s32.totalorder %s1106_s3, %s958_s27  ;;  %p962_p2 = scmp.lt.u32.totalorder %s958_s27, %s1106_s3 }
 0x2ff   :  { %p964_p3 = pnand %p962_p2, %p959_p1 }
 0x301   :  { %967 = shalt.err (!%p964_p3)
}
 0x302   :  { %789 = dma.vmem_to_hbm [thread:$0]  %s784_s23, 2048, %s1106_s3, [#allocation5], %s979_s0, %s979_s0, %s980_s15  }
 0x303   :  { %972 = dma.done.wait [#allocation5], 2048  }
 0x304   :  { %973 = vsyncadd [#allocation5], 4294965248 }
 0x305   :  { %793 = vsyncpa [#allocation4], 1 }
 0x306   :  { %794 = vsyncpa [#allocation7], 1 }
 0x307   :  { %795 = vsyncpa [#allocation5], 1 }

</bundles_post_ra>
